<compile_context>
chip_gen: v6e
topology: v6e:2x2x1
jax: 0.10.0
libtpu: 0.0.40
codegen_flags: <defaults>
</compile_context>

<pallas_src>
import functools

import jax
import jax.numpy as jnp
from jax.experimental import pallas as pl
from jax.experimental.pallas import tpu as pltpu

IN_FEATURES = 10
OUT_FEATURES = 5


def linear_kernel(x_ref, w_ref, b_ref, o_ref):
    # x_ref: (TB, 10), w_ref: (10, 5), b_ref: (1, 5), o_ref: (TB, 5)
    acc = jnp.dot(x_ref[...], w_ref[...], preferred_element_type=jnp.float32)
    o_ref[...] = (acc + b_ref[...]).astype(o_ref.dtype)


def _round_up(n, m):
    return ((n + m - 1) // m) * m


@functools.partial(jax.jit, static_argnames=("block_batch",))
def linear_forward(x, weight, bias, *, block_batch=4096):
    """Equivalent of nn.Linear(10, 5): y = x @ weight.T + bias.

    x:      (B, 10) float32
    weight: (5, 10) float32  (PyTorch layout: [out_features, in_features])
    bias:   (5,)    float32
    """
    batch = x.shape[0]

    # Fused (under jit) layout prep: transpose weight once, 2-D bias.
    w_t = weight.T                          # (10, 5)
    b2d = bias.reshape(1, OUT_FEATURES)     # (1, 5)

    # Batch tile: multiple of 8 sublanes, capped by block_batch.
    tb = min(block_batch, _round_up(batch, 8))
    padded_batch = _round_up(batch, tb)
    if padded_batch != batch:
        x = jnp.pad(x, ((0, padded_batch - batch), (0, 0)))

    grid = (padded_batch // tb,)

    cost = pl.CostEstimate(
        flops=2 * padded_batch * IN_FEATURES * OUT_FEATURES,
        transcendentals=0,
        bytes_accessed=(
            padded_batch * (IN_FEATURES + OUT_FEATURES) * 4
            + (IN_FEATURES * OUT_FEATURES + OUT_FEATURES) * 4
        ),
    )

    out_padded = pl.pallas_call(
        linear_kernel,
        out_shape=jax.ShapeDtypeStruct((padded_batch, OUT_FEATURES), x.dtype),
        grid=grid,
        in_specs=[
            # x: one batch tile per grid step (double-buffered by the pipeline).
            pl.BlockSpec((tb, IN_FEATURES), lambda i: (i, 0)),
            # weight / bias: resident across all grid steps.
            pl.BlockSpec((IN_FEATURES, OUT_FEATURES), lambda i: (0, 0)),
            pl.BlockSpec((1, OUT_FEATURES), lambda i: (0, 0)),
        ],
        out_specs=pl.BlockSpec((tb, OUT_FEATURES), lambda i: (i, 0)),
        compiler_params=pltpu.CompilerParams(
            dimension_semantics=("parallel",),
        ),
        cost_estimate=cost,
    )(x, w_t, b2d)

    return out_padded[:batch]


if __name__ == "__main__":
    key = jax.random.PRNGKey(0)
    kx, kw, kb = jax.random.split(key, 3)

    batch = 8
    # Deterministic parameter init (mimics nn.Linear's uniform(-1/sqrt(in), 1/sqrt(in))).
    bound = 1.0 / (IN_FEATURES ** 0.5)
    weight = jax.random.uniform(
        kw, (OUT_FEATURES, IN_FEATURES), jnp.float32, -bound, bound)
    bias = jax.random.uniform(kb, (OUT_FEATURES,), jnp.float32, -bound, bound)
    x = jax.random.normal(kx, (batch, IN_FEATURES), jnp.float32)

    out = linear_forward(x, weight, bias)
    out = jax.block_until_ready(out)

    # Sanity check against plain-JAX reference.
    ref = x @ weight.T + bias
    assert out.shape == (batch, OUT_FEATURES)
    assert jnp.allclose(out, ref, atol=1e-5, rtol=1e-5)

    print("KERNEL_OK")
</pallas_src>

<mosaic_0001>
module attributes {stable_mosaic.version = 11 : i64} {
  func.func @linear_kernel(%arg0: i32, %arg1: memref<8x10xf32, #tpu.memory_space<vmem>>, %arg2: memref<10x5xf32, #tpu.memory_space<vmem>>, %arg3: memref<1x5xf32, #tpu.memory_space<vmem>>, %arg4: memref<8x5xf32, #tpu.memory_space<vmem>>) attributes {dimension_semantics = [#tpu.dimension_semantics<parallel>], iteration_bounds = array<i64: 1>, scalar_prefetch = 0 : i64, scratch_operands = 0 : i64, tpu.core_type = #tpu.core_type<tc>, window_params = [{transform_indices = @transform_0, window_bounds = array<i64: 8, 10>}, {pipeline_mode = #tpu.pipeline_mode<synchronous>, transform_indices = @transform_1, window_bounds = array<i64: 10, 5>}, {pipeline_mode = #tpu.pipeline_mode<synchronous>, transform_indices = @transform_2, window_bounds = array<i64: 1, 5>}, {transform_indices = @transform_3, window_bounds = array<i64: 8, 5>}]} {
    %c0 = arith.constant 0 : index
    %c0_0 = arith.constant 0 : index
    %0 = vector.load %arg1[%c0, %c0_0] : memref<8x10xf32, #tpu.memory_space<vmem>>, vector<8x10xf32>
    %c0_1 = arith.constant 0 : index
    %c0_2 = arith.constant 0 : index
    %1 = vector.load %arg2[%c0_1, %c0_2] : memref<10x5xf32, #tpu.memory_space<vmem>>, vector<10x5xf32>
    %cst = arith.constant dense<0.000000e+00> : vector<8x5xf32>
    %2 = tpu.matmul %0, %1, %cst {dimension_numbers = #tpu.dot_dimension_numbers<[1], [0], [0], [1], [0, 0, 1, 1], [], []>} : vector<8x10xf32>, vector<10x5xf32>, vector<8x5xf32> -> vector<8x5xf32>
    %c0_3 = arith.constant 0 : index
    %c0_4 = arith.constant 0 : index
    %3 = vector.load %arg3[%c0_3, %c0_4] : memref<1x5xf32, #tpu.memory_space<vmem>>, vector<1x5xf32>
    %4 = vector.broadcast %3 : vector<1x5xf32> to vector<8x5xf32>
    %5 = arith.addf %2, %4 : vector<8x5xf32>
    %c0_5 = arith.constant 0 : index
    %c0_6 = arith.constant 0 : index
    %6 = vector.load %arg4[%c0_5, %c0_6] : memref<8x5xf32, #tpu.memory_space<vmem>>, vector<8x5xf32>
    tpu.vector_store %arg4[%c0_5, %c0_6], %5 {strides = array<i32>} : memref<8x5xf32, #tpu.memory_space<vmem>>, vector<8x5xf32>,
    return
  }
  func.func @transform_0(%arg0: i32) -> (i32, i32) {
    %c0_i32 = arith.constant 0 : i32
    %c0_i32_0 = arith.constant 0 : i32
    return %arg0, %c0_i32 : i32, i32
  }
  func.func @transform_1(%arg0: i32) -> (i32, i32) {
    %c0_i32 = arith.constant 0 : i32
    %c0_i32_0 = arith.constant 0 : i32
    %c0_i32_1 = arith.constant 0 : i32
    return %c0_i32, %c0_i32_0 : i32, i32
  }
  func.func @transform_2(%arg0: i32) -> (i32, i32) {
    %c0_i32 = arith.constant 0 : i32
    %c0_i32_0 = arith.constant 0 : i32
    %c0_i32_1 = arith.constant 0 : i32
    return %c0_i32, %c0_i32_0 : i32, i32
  }
  func.func @transform_3(%arg0: i32) -> (i32, i32) {
    %c0_i32 = arith.constant 0 : i32
    %c0_i32_0 = arith.constant 0 : i32
    return %arg0, %c0_i32 : i32, i32
  }
}

</mosaic_0001>

<bundles_post_ra>
// kernel: linear_forward.1
= control target key start
LH: loop header
LB: loop body
LE: loop exit
PB: predicated region body
PF: predicated region fallthrough
CT: control target
= control target key end

     0   :  { %vm29_vm0 = vcmask 1041408   ;;  %v157_v1 = vmov 0.0   ;;  %vm158_vm1 = vmmov 0   ;;  %s195_s0 = inlined_call_operand.vmem [shape: f32[8,10], index: 0, kind: input, shape index: {}]   ;;  %s196_s1 = inlined_call_operand.vmem [shape: f32[10,5], index: 1, kind: input, shape index: {}]   ;;  %s197_s2 = inlined_call_operand.vmem [shape: f32[1,5], index: 2, kind: input, shape index: {}]   ;;  %s198_s3 = inlined_call_operand.hbm [shape: f32[8,5], index: 3, kind: output, shape index: {}]  }
   0x1   :  { %v17_v0 = vld [vmem:[%s196_s1 + $0x8] sm:$0x3]  ;;  %125 = vmatprep.subr.mxu0 %v157_v1  ;;  %v16_v2 = vld [vmem:[%s196_s1] sm:$0xff]  ;;  %129 = vmatprep.mubr.msk.f32.mxu0 %vm158_vm1, %v157_v1 }
   0x2   :  { %8 = vsyncpa [#allocation3], 0  ;;  %126 = vmatpush3.msk.msra.mxu0 %vm29_vm0, %v17_v0  ;;  %v15_v3 = vld [vmem:[%s195_s0] sm:$0xff]  ;;  %vm25_vm2 = vcmask 80896   ;;  %s159_s20 = smov [#allocation2]   ;;  %vm103_vm3 = vcmask 39936  }
   0x3   :  { %127 = vmatprep.subr.mxu0 %v157_v1  ;;  %v119_v4 = vld [vmem:[%s197_s2] ss:$0 sm:$0xff]  ;;  %s111_s21 = sshll.u32 %s159_s20, 4  ;;  %s112_s21 = int_to_ptr.vmem [resolvable:$true] %s111_s21 }
   0x4   :  { %128 = vmatpush3.msra.mxu0 %v16_v2  ;;  %s135_s1 = scalar_lea.vmem %s112_s21, 128  ;;  %p140_p1 = scmp.lt.s32.totalorder %s112_s21, %s112_s21 }
   0x5   :  { %130 = vmatmul.mubr.msk.f32.vlgmr.msra.gmra.mxu0 %vm25_vm2, %v15_v3  ;;  %p136_p0 = scmp.ne.s32.totalorder %s112_s21, %s135_s1  ;;  %p141_p2 = scmp.lt.s32.totalorder %s135_s1, %s135_s1 }
   0x7   :  { %p142_p3 = por %p141_p2, %p140_p1 }
   0x9   :  { %p143_p4 = pnand %p142_p3, %p136_p0 }
  0xc5   :  { %v99_v5 = vpop.f32.mrf.mxu0 }
  0xc6   :  { %v100_v6 = vadd.f32 %v119_v4, %v99_v5 }
  0xc7   :  { %v131_v7 = vpop.f32.mrf.mxu0 }
  0xc8   :  { %104 = vst.msk [vmem:[#allocation2] sm:$0xff] %vm103_vm3, %v100_v6 }
  0xc9   :  { %146 = shalt.err (!%p143_p4)
}
  0xca   :  { %114 = dma.vmem_to_hbm [thread:$0]  %s112_s21, 128, %s198_s3, [#allocation3]  }
  0xcb   :  { %155 = dma.done.wait [#allocation3], 128  }
  0xcc   :  { %156 = vsyncadd [#allocation3], 4294967168 }
  0xcd   :  { %118 = vsyncpa [#allocation3], 1 }

</bundles_post_ra>
